<compile_context>
chip_gen: v7x
topology: tpu7x:2x2x1
jax: 0.10.0
libtpu: 0.0.40
codegen_flags: <defaults>
</compile_context>

<pallas_src>
import math

import jax
import jax.numpy as jnp
from jax import lax
from jax.experimental import pallas as pl
from jax.experimental.pallas import tpu as pltpu

# ---------------- model dimensions (small, synthetic) ----------------
B = 2              # batch
S = 8              # sequence length
H = 32             # hidden size
F = 4 * H          # MLP hidden (128)
V = 128            # vocab size
N = B * S          # flattened tokens (16)
EPS = 1e-5
IGNORE_INDEX = -100

assert S & (S - 1) == 0, "S must be a power of two for the in-kernel batch-id shift"
S_SHIFT = S.bit_length() - 1
INV_SQRT_H = 1.0 / math.sqrt(H)

# rows of the packed (8, 128) f32 vector-parameter slab
ROW_LN1_G, ROW_LN1_B, ROW_LN2_G, ROW_LN2_B, ROW_B2, ROW_B1 = 0, 1, 2, 3, 4, 5
VECS_W = 128

# 128-lane blocks of the packed (H, 8*128) bf16 weight slab
BLK = 128
BLK_EMB, BLK_WQ, BLK_WK, BLK_WV, BLK_WO_T, BLK_W1, BLK_W2_T, BLK_WLM = range(8)
W_SLAB_COLS = 8 * BLK


# ---------------------------------------------------------------------------
# Single fused kernel: embedding + transformer block + LM head + causal-LM loss
# ---------------------------------------------------------------------------
def _fused_forward_kernel(ids_ref, mask_ref, labels_ref, vec_ref, w_ref,
                          logits_ref, loss_ref):
    f32 = jnp.float32
    bf16 = jnp.bfloat16

    def mm(a, b):
        # (M,K) @ (K,Nc) -> (M,Nc); bf16 into the MXU, f32 accumulation.
        return jnp.dot(a.astype(bf16), b.astype(bf16), preferred_element_type=f32)

    def mm_rt(a, b_t):
        # (M,K) x (Nc,K) -> (M,Nc): contract trailing dims, no explicit transpose.
        return lax.dot_general(a.astype(bf16), b_t.astype(bf16),
                               dimension_numbers=(((1,), (1,)), ((), ())),
                               preferred_element_type=f32)

    # ---- packed parameters ----
    vecs = vec_ref[...]                                        # (8, 128) f32
    ln1_g = vecs[ROW_LN1_G:ROW_LN1_G + 1, 0:H]
    ln1_b = vecs[ROW_LN1_B:ROW_LN1_B + 1, 0:H]
    ln2_g = vecs[ROW_LN2_G:ROW_LN2_G + 1, 0:H]
    ln2_b = vecs[ROW_LN2_B:ROW_LN2_B + 1, 0:H]
    b2 = vecs[ROW_B2:ROW_B2 + 1, 0:H]
    b1 = vecs[ROW_B1:ROW_B1 + 1, 0:F]

    # all slices are at 128-lane boundaries -> free views
    embed_t = w_ref[:, BLK_EMB * BLK:(BLK_EMB + 1) * BLK]      # (H, V)   = embed^T
    wqkv = w_ref[:, BLK_WQ * BLK:(BLK_WV + 1) * BLK]           # (H, 384) = [wq|0 | wk|0 | wv|0]
    wo_t = w_ref[:, BLK_WO_T * BLK:(BLK_WO_T + 1) * BLK]       # (H, 128) = [wo^T | 0]
    w1 = w_ref[:, BLK_W1 * BLK:(BLK_W1 + 1) * BLK]             # (H, F)
    w2_t = w_ref[:, BLK_W2_T * BLK:(BLK_W2_T + 1) * BLK]       # (H, F)   = w2^T
    wlm = w_ref[:, BLK_WLM * BLK:(BLK_WLM + 1) * BLK]          # (H, V)

    # ---- embedding lookup fused in-kernel: one-hot matmul on the idle MXU ----
    ids = ids_ref[...]                                         # (N, 1) int32
    vocab_iota = lax.broadcasted_iota(jnp.int32, (N, V), 1)
    onehot_ids = jnp.where(vocab_iota == ids, 1.0, 0.0)        # (N, V) f32 (exact 0/1)
    x = mm_rt(onehot_ids, embed_t)                             # (N, H) == embed[ids]

    # ---- LayerNorm 1 (f32 VPU) ----
    mu = jnp.mean(x, axis=-1, keepdims=True)
    var = jnp.mean((x - mu) ** 2, axis=-1, keepdims=True)
    h = (x - mu) * lax.rsqrt(var + EPS) * ln1_g + ln1_b

    # ---- fused QKV projection; q/k/v each land on their own 128-lane tile ----
    qkv = mm(h, wqkv)                                          # (N, 3*128)
    q = qkv[:, 0 * BLK:1 * BLK]                                # (N, 128), lanes H: are zero
    k = qkv[:, 1 * BLK:2 * BLK]
    v = qkv[:, 2 * BLK:3 * BLK]

    # ---- causal block-diagonal self-attention over flattened tokens (no k.T) ----
    scores = mm_rt(q, k) * INV_SQRT_H                          # (N, N); padded lanes add 0
    row = lax.broadcasted_iota(jnp.int32, (N, N), 0)
    col = lax.broadcasted_iota(jnp.int32, (N, N), 1)
    # compile-time-derivable masks; independent of the matmul chain, schedules as filler
    same_batch = lax.shift_right_logical(row, S_SHIFT) == lax.shift_right_logical(col, S_SHIFT)
    causal = row >= col
    key_ok = mask_ref[...] > 0                                 # (1, N) runtime key-padding mask
    allowed = jnp.logical_and(jnp.logical_and(same_batch, causal), key_ok)

    scores = jnp.where(allowed, scores, -1e30)
    m = jnp.max(scores, axis=-1, keepdims=True)
    p = jnp.where(allowed, jnp.exp(scores - m), 0.0)           # fully-masked rows -> all zero
    denom = jnp.maximum(jnp.sum(p, axis=-1, keepdims=True), 1e-30)
    p = p * pl.reciprocal(denom, approx=True)                  # EUP slot (approx ~1e-4 rel err)

    attn = mm(p, v)                                            # (N, 128), lanes H: are zero
    x = x + mm_rt(attn, wo_t)                                  # (N, H)

    # ---- LayerNorm 2 + MLP (f32 elementwise, bf16 matmuls) ----
    mu2 = jnp.mean(x, axis=-1, keepdims=True)
    var2 = jnp.mean((x - mu2) ** 2, axis=-1, keepdims=True)
    h2 = (x - mu2) * lax.rsqrt(var2 + EPS) * ln2_g + ln2_b
    hid = jax.nn.gelu(mm(h2, w1) + b1)                         # (N, F)
    x = x + mm_rt(hid, w2_t) + b2                              # (N, H)

    # ---- LM head (lane-dense V=128 output) ----
    logits = mm(x, wlm)                                        # (N, V) f32
    logits_ref[...] = logits

    # ---- loss epilogue: HF shift-by-one done in-kernel via a constant shift matrix ----
    # shift_mat[n, m] = 1 iff m == n+1 and same sequence  ->  row n of (shift_mat @ onehot_lab)
    # is the one-hot of labels[n+1] (all-zero at sequence ends or where labels[n+1] == -100).
    labels = labels_ref[...]                                   # (N, 1) int32
    onehot_lab = jnp.where(vocab_iota == labels, 1.0, 0.0)     # (N, V)
    shift_mat = jnp.where(jnp.logical_and(col == row + 1, same_batch), 1.0, 0.0)  # (N, N)
    tgt_onehot = mm(shift_mat, onehot_lab)                     # (N, V), exact 0/1

    mmax = jnp.max(logits, axis=-1, keepdims=True)
    lse = mmax + jnp.log(jnp.sum(jnp.exp(logits - mmax), axis=-1, keepdims=True))   # (N, 1)
    picked = jnp.sum(tgt_onehot * logits, axis=-1, keepdims=True)                   # (N, 1)
    valid = jnp.sum(tgt_onehot, axis=-1, keepdims=True)        # 1.0 where a real target exists
    nll = valid * (lse - picked)

    count = jnp.sum(valid)
    # NOTE: PyTorch CrossEntropyLoss returns NaN when count == 0; we clamp to 0 instead.
    loss_ref[0] = jnp.sum(nll) / jnp.maximum(count, 1.0)


def _run_fused(ids_col, mask_row, labels_col, params):
    vmem = pltpu.MemorySpace.VMEM
    return pl.pallas_call(
        _fused_forward_kernel,
        out_shape=(jax.ShapeDtypeStruct((N, V), jnp.float32),   # logits (lane-dense)
                   jax.ShapeDtypeStruct((1,), jnp.float32)),    # scalar loss via SMEM
        in_specs=[pl.BlockSpec(memory_space=vmem)] * 5,
        out_specs=(pl.BlockSpec(memory_space=vmem),
                   pl.BlockSpec(memory_space=pltpu.MemorySpace.SMEM)),
    )(ids_col, mask_row, labels_col, params["vecs"], params["w_slab"])


# ---------------------------------------------------------------------------
# LanguageModelFinetuner.forward equivalent -> (loss, logits)
# ---------------------------------------------------------------------------
@jax.jit
def finetuner_forward(params, input_ids, attention_mask, labels):
    """Returns (loss, logits) like LMOutput(loss=..., logits=...)."""
    ids_col = input_ids.astype(jnp.int32).reshape(N, 1)
    labels_col = labels.astype(jnp.int32).reshape(N, 1)
    mask_row = attention_mask.astype(jnp.int32).reshape(1, N)
    logits_flat, loss = _run_fused(ids_col, mask_row, labels_col, params)
    return loss[0], logits_flat.reshape(B, S, V)


# ---------------------------------------------------------------------------
# Deterministic parameter init (packed, lane-dense layout)
# ---------------------------------------------------------------------------
def init_params(key):
    ks = jax.random.split(key, 8)
    scale = 0.02
    nrm = lambda k, shp: scale * jax.random.normal(k, shp, jnp.float32)

    embed = nrm(ks[0], (V, H))
    wq, wk, wv, wo = (nrm(ks[i], (H, H)) for i in range(1, 5))
    w1 = nrm(ks[5], (H, F))
    w2 = nrm(ks[6], (F, H))
    w_lm = nrm(ks[7], (H, V))

    def pad128(w):  # (H, c) -> (H, 128), zero padded output columns
        return jnp.pad(w, ((0, 0), (0, BLK - w.shape[1])))

    w_slab = jnp.concatenate([
        embed.T,        # block 0: embed^T   (contract lanes with one-hot ids)
        pad128(wq),     # block 1: wq | 0
        pad128(wk),     # block 2: wk | 0
        pad128(wv),     # block 3: wv | 0
        pad128(wo.T),   # block 4: wo^T | 0  (contract lanes with padded attn out)
        w1,             # block 5: w1
        w2.T,           # block 6: w2^T      (contract lanes with MLP hidden)
        w_lm,           # block 7: lm head
    ], axis=1).astype(jnp.bfloat16)
    assert w_slab.shape == (H, W_SLAB_COLS)

    vecs = jnp.zeros((8, VECS_W), jnp.float32)
    vecs = vecs.at[ROW_LN1_G, :H].set(1.0)   # ln1 gamma = 1
    vecs = vecs.at[ROW_LN2_G, :H].set(1.0)   # ln2 gamma = 1
    # ln betas, b1, b2 start at zero; rows 6-7 are padding

    return {"vecs": vecs, "w_slab": w_slab}


# ---------------------------------------------------------------------------
# Pure-JAX reference (same bf16-weight / f32-accumulate math) for a sanity check
# ---------------------------------------------------------------------------
def reference_forward(params, input_ids, attention_mask, labels):
    w, vecs = params["w_slab"], params["vecs"]
    blk = lambda i: w[:, i * BLK:(i + 1) * BLK]
    embed_t = blk(BLK_EMB)
    wq, wk, wv = blk(BLK_WQ)[:, :H], blk(BLK_WK)[:, :H], blk(BLK_WV)[:, :H]
    wo = blk(BLK_WO_T)[:, :H].T
    w1, w2, wlm = blk(BLK_W1), blk(BLK_W2_T).T, blk(BLK_WLM)
    ln1_g, ln1_b, ln2_g, ln2_b = vecs[0, :H], vecs[1, :H], vecs[2, :H], vecs[3, :H]
    b2, b1 = vecs[4, :H], vecs[5, :F]

    bf = lambda a: a.astype(jnp.bfloat16)
    dot = lambda a, b: jnp.dot(bf(a), bf(b), preferred_element_type=jnp.float32)

    def ln(z, g, b):
        mu = jnp.mean(z, -1, keepdims=True)
        var = jnp.mean((z - mu) ** 2, -1, keepdims=True)
        return (z - mu) * lax.rsqrt(var + EPS) * g + b

    ids = input_ids.reshape(N)
    x = embed_t.T.astype(jnp.float32)[ids]                       # (N, H)
    h = ln(x, ln1_g, ln1_b)
    q, k, v = dot(h, wq), dot(h, wk), dot(h, wv)
    s = dot(q, k.T) * INV_SQRT_H
    r = jnp.arange(N)[:, None]
    c = jnp.arange(N)[None, :]
    allowed = (r // S == c // S) & (r >= c) & (attention_mask.reshape(1, N) > 0)
    s = jnp.where(allowed, s, -1e30)
    p = jnp.where(allowed, jnp.exp(s - jnp.max(s, -1, keepdims=True)), 0.0)
    p = p / jnp.maximum(jnp.sum(p, -1, keepdims=True), 1e-30)
    x = x + dot(dot(p, v), wo)
    h2 = ln(x, ln2_g, ln2_b)
    x = x + dot(jax.nn.gelu(dot(h2, w1) + b1), w2) + b2
    logits = dot(x, wlm)                                         # (N, V)

    tgt = jnp.concatenate(
        [labels[:, 1:], jnp.full((B, 1), IGNORE_INDEX, labels.dtype)], axis=1).reshape(N)
    valid = tgt != IGNORE_INDEX
    lse = jax.nn.logsumexp(logits, axis=-1)
    picked = logits[jnp.arange(N), jnp.where(valid, tgt, 0)]
    nll = jnp.where(valid, lse - picked, 0.0)
    loss = jnp.sum(nll) / jnp.maximum(jnp.sum(valid), 1)
    return loss, logits.reshape(B, S, V)


if __name__ == "__main__":
    key = jax.random.PRNGKey(0)
    pkey, ikey = jax.random.split(key)
    params = init_params(pkey)

    input_ids = jax.random.randint(ikey, (B, S), 0, V, dtype=jnp.int32)
    # last two positions of batch element 1 are padding
    attention_mask = jnp.ones((B, S), jnp.int32).at[1, -2:].set(0)
    # labels: same as input_ids, padding positions ignored (-100), HF-style
    labels = jnp.where(attention_mask == 1, input_ids, IGNORE_INDEX).astype(jnp.int32)

    loss, logits = finetuner_forward(params, input_ids, attention_mask, labels)
    jax.block_until_ready((loss, logits))

    assert logits.shape == (B, S, V)
    assert loss.shape == ()
    assert bool(jnp.isfinite(loss))

    # sanity check against the pure-JAX reference (generous tolerance: bf16 + approx recip)
    ref_loss, ref_logits = reference_forward(params, input_ids, attention_mask, labels)
    assert float(jnp.max(jnp.abs(logits - ref_logits))) < 2e-3, "logits mismatch vs reference"
    assert abs(float(loss) - float(ref_loss)) < 2e-3, "loss mismatch vs reference"

    print("KERNEL_OK")
</pallas_src>

<mosaic_0001>
module attributes {stable_mosaic.version = 11 : i64} {
  func.func @_fused_forward_kernel(%arg0: memref<16x1xi32, #tpu.memory_space<vmem>>, %arg1: memref<1x16xi32, #tpu.memory_space<vmem>>, %arg2: memref<16x1xi32, #tpu.memory_space<vmem>>, %arg3: memref<8x128xf32, #tpu.memory_space<vmem>>, %arg4: memref<32x1024xbf16, #tpu.memory_space<vmem>>, %arg5: memref<16x128xf32, #tpu.memory_space<vmem>>, %arg6: memref<1xf32, #tpu.memory_space<smem>>) attributes {dimension_semantics = [], scalar_prefetch = 0 : i64, scratch_operands = 0 : i64, tpu.core_type = #tpu.core_type<tc>} {
    %c0 = arith.constant 0 : index
    %c0_0 = arith.constant 0 : index
    %0 = vector.load %arg3[%c0, %c0_0] : memref<8x128xf32, #tpu.memory_space<vmem>>, vector<8x128xf32>
    %1 = vector.extract_strided_slice %0 {offsets = [0, 0], sizes = [1, 32], strides = [1, 1]} : vector<8x128xf32> to vector<1x32xf32>
    %2 = vector.extract_strided_slice %0 {offsets = [1, 0], sizes = [1, 32], strides = [1, 1]} : vector<8x128xf32> to vector<1x32xf32>
    %3 = vector.extract_strided_slice %0 {offsets = [2, 0], sizes = [1, 32], strides = [1, 1]} : vector<8x128xf32> to vector<1x32xf32>
    %4 = vector.extract_strided_slice %0 {offsets = [3, 0], sizes = [1, 32], strides = [1, 1]} : vector<8x128xf32> to vector<1x32xf32>
    %5 = vector.extract_strided_slice %0 {offsets = [4, 0], sizes = [1, 32], strides = [1, 1]} : vector<8x128xf32> to vector<1x32xf32>
    %6 = vector.extract_strided_slice %0 {offsets = [5, 0], sizes = [1, 128], strides = [1, 1]} : vector<8x128xf32> to vector<1x128xf32>
    %c0_1 = arith.constant 0 : index
    %c0_2 = arith.constant 0 : index
    %7 = vector.load %arg4[%c0_1, %c0_2] : memref<32x1024xbf16, #tpu.memory_space<vmem>>, vector<32x128xbf16>
    %c0_3 = arith.constant 0 : index
    %c128 = arith.constant 128 : index
    %8 = vector.load %arg4[%c0_3, %c128] : memref<32x1024xbf16, #tpu.memory_space<vmem>>, vector<32x384xbf16>
    %c0_4 = arith.constant 0 : index
    %c512 = arith.constant 512 : index
    %9 = vector.load %arg4[%c0_4, %c512] : memref<32x1024xbf16, #tpu.memory_space<vmem>>, vector<32x128xbf16>
    %c0_5 = arith.constant 0 : index
    %c640 = arith.constant 640 : index
    %10 = vector.load %arg4[%c0_5, %c640] : memref<32x1024xbf16, #tpu.memory_space<vmem>>, vector<32x128xbf16>
    %c0_6 = arith.constant 0 : index
    %c768 = arith.constant 768 : index
    %11 = vector.load %arg4[%c0_6, %c768] : memref<32x1024xbf16, #tpu.memory_space<vmem>>, vector<32x128xbf16>
    %c0_7 = arith.constant 0 : index
    %c896 = arith.constant 896 : index
    %12 = vector.load %arg4[%c0_7, %c896] : memref<32x1024xbf16, #tpu.memory_space<vmem>>, vector<32x128xbf16>
    %c0_8 = arith.constant 0 : index
    %c0_9 = arith.constant 0 : index
    %13 = vector.load %arg0[%c0_8, %c0_9] : memref<16x1xi32, #tpu.memory_space<vmem>>, vector<16x1xi32>
    %14 = tpu.iota {dimensions = array<i32: 1>} : vector<16x128xi32>
    %15 = vector.broadcast %13 : vector<16x1xi32> to vector<16x128xi32>
    %16 = arith.cmpi eq, %14, %15 : vector<16x128xi32>
    %cst = arith.constant 1.000000e+00 : f32
    %cst_10 = arith.constant 0.000000e+00 : f32
    %17 = vector.broadcast %cst : f32 to vector<16x128xf32>
    %18 = vector.broadcast %cst_10 : f32 to vector<16x128xf32>
    %19 = arith.select %16, %17, %18 : vector<16x128xi1>, vector<16x128xf32>
    %20 = arith.truncf %19 : vector<16x128xf32> to vector<16x128xbf16>
    %cst_11 = arith.constant dense<0.000000e+00> : vector<16x32xf32>
    %21 = tpu.matmul %20, %7, %cst_11 {dimension_numbers = #tpu.dot_dimension_numbers<[1], [1], [0], [0], [0, 0, 1, 0], [], []>} : vector<16x128xbf16>, vector<32x128xbf16>, vector<16x32xf32> -> vector<16x32xf32>
    %cst_12 = arith.constant dense<0.000000e+00> : vector<16xf32>
    %22 = vector.multi_reduction <add>, %21, %cst_12 [1] : vector<16x32xf32> to vector<16xf32>
    %23 = vector.shape_cast %22 : vector<16xf32> to vector<16x1xf32>
    %cst_13 = arith.constant 3.200000e+01 : f32
    %24 = vector.broadcast %cst_13 : f32 to vector<16x1xf32>
    %25 = arith.divf %23, %24 : vector<16x1xf32>
    %26 = vector.broadcast %25 : vector<16x1xf32> to vector<16x32xf32>
    %27 = arith.subf %21, %26 : vector<16x32xf32>
    %28 = arith.mulf %27, %27 : vector<16x32xf32>
    %cst_14 = arith.constant dense<0.000000e+00> : vector<16xf32>
    %29 = vector.multi_reduction <add>, %28, %cst_14 [1] : vector<16x32xf32> to vector<16xf32>
    %30 = vector.shape_cast %29 : vector<16xf32> to vector<16x1xf32>
    %cst_15 = arith.constant 3.200000e+01 : f32
    %31 = vector.broadcast %cst_15 : f32 to vector<16x1xf32>
    %32 = arith.divf %30, %31 : vector<16x1xf32>
    %33 = vector.broadcast %25 : vector<16x1xf32> to vector<16x32xf32>
    %34 = arith.subf %21, %33 : vector<16x32xf32>
    %cst_16 = arith.constant 9.99999974E-6 : f32
    %35 = vector.broadcast %cst_16 : f32 to vector<16x1xf32>
    %36 = arith.addf %32, %35 : vector<16x1xf32>
    %37 = math.rsqrt %36 : vector<16x1xf32>
    %38 = vector.broadcast %37 : vector<16x1xf32> to vector<16x32xf32>
    %39 = arith.mulf %34, %38 : vector<16x32xf32>
    %40 = vector.broadcast %1 : vector<1x32xf32> to vector<16x32xf32>
    %41 = arith.mulf %39, %40 : vector<16x32xf32>
    %42 = vector.broadcast %2 : vector<1x32xf32> to vector<16x32xf32>
    %43 = arith.addf %41, %42 : vector<16x32xf32>
    %44 = arith.truncf %43 : vector<16x32xf32> to vector<16x32xbf16>
    %cst_17 = arith.constant dense<0.000000e+00> : vector<16x384xf32>
    %45 = tpu.matmul %44, %8, %cst_17 {dimension_numbers = #tpu.dot_dimension_numbers<[1], [0], [0], [1], [0, 0, 1, 1], [], []>} : vector<16x32xbf16>, vector<32x384xbf16>, vector<16x384xf32> -> vector<16x384xf32>
    %46 = vector.extract_strided_slice %45 {offsets = [0, 0], sizes = [16, 128], strides = [1, 1]} : vector<16x384xf32> to vector<16x128xf32>
    %47 = vector.extract_strided_slice %45 {offsets = [0, 128], sizes = [16, 128], strides = [1, 1]} : vector<16x384xf32> to vector<16x128xf32>
    %48 = vector.extract_strided_slice %45 {offsets = [0, 256], sizes = [16, 128], strides = [1, 1]} : vector<16x384xf32> to vector<16x128xf32>
    %49 = arith.truncf %46 : vector<16x128xf32> to vector<16x128xbf16>
    %50 = arith.truncf %47 : vector<16x128xf32> to vector<16x128xbf16>
    %cst_18 = arith.constant dense<0.000000e+00> : vector<16x16xf32>
    %51 = tpu.matmul %49, %50, %cst_18 {dimension_numbers = #tpu.dot_dimension_numbers<[1], [1], [0], [0], [0, 0, 1, 0], [], []>} : vector<16x128xbf16>, vector<16x128xbf16>, vector<16x16xf32> -> vector<16x16xf32>
    %cst_19 = arith.constant 0.176776692 : f32
    %52 = vector.broadcast %cst_19 : f32 to vector<16x16xf32>
    %53 = arith.mulf %51, %52 : vector<16x16xf32>
    %54 = tpu.iota {dimensions = array<i32: 0>} : vector<16x16xi32>
    %55 = tpu.iota {dimensions = array<i32: 1>} : vector<16x16xi32>
    %c3_i32 = arith.constant 3 : i32
    %56 = vector.broadcast %c3_i32 : i32 to vector<16x16xi32>
    %57 = arith.shrui %54, %56 : vector<16x16xi32>
    %c3_i32_20 = arith.constant 3 : i32
    %58 = vector.broadcast %c3_i32_20 : i32 to vector<16x16xi32>
    %59 = arith.shrui %55, %58 : vector<16x16xi32>
    %60 = arith.cmpi eq, %57, %59 : vector<16x16xi32>
    %61 = arith.cmpi sge, %54, %55 : vector<16x16xi32>
    %c0_21 = arith.constant 0 : index
    %c0_22 = arith.constant 0 : index
    %62 = vector.load %arg1[%c0_21, %c0_22] : memref<1x16xi32, #tpu.memory_space<vmem>>, vector<1x16xi32>
    %c0_i32 = arith.constant 0 : i32
    %63 = vector.broadcast %c0_i32 : i32 to vector<1x16xi32>
    %64 = arith.cmpi sgt, %62, %63 : vector<1x16xi32>
    %65 = arith.andi %60, %61 : vector<16x16xi1>
    %66 = vector.broadcast %64 : vector<1x16xi1> to vector<16x16xi1>
    %67 = arith.andi %65, %66 : vector<16x16xi1>
    %cst_23 = arith.constant -1.000000e+30 : f32
    %68 = vector.broadcast %cst_23 : f32 to vector<16x16xf32>
    %69 = arith.select %67, %53, %68 : vector<16x16xi1>, vector<16x16xf32>
    %cst_24 = arith.constant dense<0xFF800000> : vector<16xf32>
    %70 = vector.multi_reduction <maximumf>, %69, %cst_24 [1] : vector<16x16xf32> to vector<16xf32>
    %71 = vector.shape_cast %70 : vector<16xf32> to vector<16x1xf32>
    %72 = vector.broadcast %71 : vector<16x1xf32> to vector<16x16xf32>
    %73 = arith.subf %69, %72 : vector<16x16xf32>
    %74 = math.exp %73 : vector<16x16xf32>
    %cst_25 = arith.constant 0.000000e+00 : f32
    %75 = vector.broadcast %cst_25 : f32 to vector<16x16xf32>
    %76 = arith.select %67, %74, %75 : vector<16x16xi1>, vector<16x16xf32>
    %cst_26 = arith.constant dense<0.000000e+00> : vector<16xf32>
    %77 = vector.multi_reduction <add>, %76, %cst_26 [1] : vector<16x16xf32> to vector<16xf32>
    %78 = vector.shape_cast %77 : vector<16xf32> to vector<16x1xf32>
    %cst_27 = arith.constant 1.000000e-30 : f32
    %79 = vector.broadcast %cst_27 : f32 to vector<16x1xf32>
    %80 = arith.maximumf %78, %79 : vector<16x1xf32>
    %81 = tpu.reciprocal %80 {approx = true} : vector<16x1xf32> -> vector<16x1xf32>
    %82 = vector.broadcast %81 : vector<16x1xf32> to vector<16x16xf32>
    %83 = arith.mulf %76, %82 : vector<16x16xf32>
    %84 = arith.truncf %83 : vector<16x16xf32> to vector<16x16xbf16>
    %85 = arith.truncf %48 : vector<16x128xf32> to vector<16x128xbf16>
    %cst_28 = arith.constant dense<0.000000e+00> : vector<16x128xf32>
    %86 = tpu.matmul %84, %85, %cst_28 {dimension_numbers = #tpu.dot_dimension_numbers<[1], [0], [0], [1], [0, 0, 1, 1], [], []>} : vector<16x16xbf16>, vector<16x128xbf16>, vector<16x128xf32> -> vector<16x128xf32>
    %87 = arith.truncf %86 : vector<16x128xf32> to vector<16x128xbf16>
    %cst_29 = arith.constant dense<0.000000e+00> : vector<16x32xf32>
    %88 = tpu.matmul %87, %9, %cst_29 {dimension_numbers = #tpu.dot_dimension_numbers<[1], [1], [0], [0], [0, 0, 1, 0], [], []>} : vector<16x128xbf16>, vector<32x128xbf16>, vector<16x32xf32> -> vector<16x32xf32>
    %89 = arith.addf %21, %88 : vector<16x32xf32>
    %cst_30 = arith.constant dense<0.000000e+00> : vector<16xf32>
    %90 = vector.multi_reduction <add>, %89, %cst_30 [1] : vector<16x32xf32> to vector<16xf32>
    %91 = vector.shape_cast %90 : vector<16xf32> to vector<16x1xf32>
    %cst_31 = arith.constant 3.200000e+01 : f32
    %92 = vector.broadcast %cst_31 : f32 to vector<16x1xf32>
    %93 = arith.divf %91, %92 : vector<16x1xf32>
    %94 = vector.broadcast %93 : vector<16x1xf32> to vector<16x32xf32>
    %95 = arith.subf %89, %94 : vector<16x32xf32>
    %96 = arith.mulf %95, %95 : vector<16x32xf32>
    %cst_32 = arith.constant dense<0.000000e+00> : vector<16xf32>
    %97 = vector.multi_reduction <add>, %96, %cst_32 [1] : vector<16x32xf32> to vector<16xf32>
    %98 = vector.shape_cast %97 : vector<16xf32> to vector<16x1xf32>
    %cst_33 = arith.constant 3.200000e+01 : f32
    %99 = vector.broadcast %cst_33 : f32 to vector<16x1xf32>
    %100 = arith.divf %98, %99 : vector<16x1xf32>
    %101 = vector.broadcast %93 : vector<16x1xf32> to vector<16x32xf32>
    %102 = arith.subf %89, %101 : vector<16x32xf32>
    %cst_34 = arith.constant 9.99999974E-6 : f32
    %103 = vector.broadcast %cst_34 : f32 to vector<16x1xf32>
    %104 = arith.addf %100, %103 : vector<16x1xf32>
    %105 = math.rsqrt %104 : vector<16x1xf32>
    %106 = vector.broadcast %105 : vector<16x1xf32> to vector<16x32xf32>
    %107 = arith.mulf %102, %106 : vector<16x32xf32>
    %108 = vector.broadcast %3 : vector<1x32xf32> to vector<16x32xf32>
    %109 = arith.mulf %107, %108 : vector<16x32xf32>
    %110 = vector.broadcast %4 : vector<1x32xf32> to vector<16x32xf32>
    %111 = arith.addf %109, %110 : vector<16x32xf32>
    %112 = arith.truncf %111 : vector<16x32xf32> to vector<16x32xbf16>
    %cst_35 = arith.constant dense<0.000000e+00> : vector<16x128xf32>
    %113 = tpu.matmul %112, %10, %cst_35 {dimension_numbers = #tpu.dot_dimension_numbers<[1], [0], [0], [1], [0, 0, 1, 1], [], []>} : vector<16x32xbf16>, vector<32x128xbf16>, vector<16x128xf32> -> vector<16x128xf32>
    %114 = vector.broadcast %6 : vector<1x128xf32> to vector<16x128xf32>
    %115 = arith.addf %113, %114 : vector<16x128xf32>
    %116 = arith.mulf %115, %115 : vector<16x128xf32>
    %117 = arith.mulf %115, %116 : vector<16x128xf32>
    %cst_36 = arith.constant 4.471500e-02 : f32
    %118 = vector.broadcast %cst_36 : f32 to vector<16x128xf32>
    %119 = arith.mulf %118, %117 : vector<16x128xf32>
    %120 = arith.addf %115, %119 : vector<16x128xf32>
    %cst_37 = arith.constant 0.797884583 : f32
    %121 = vector.broadcast %cst_37 : f32 to vector<16x128xf32>
    %122 = arith.mulf %121, %120 : vector<16x128xf32>
    %123 = math.tanh %122 : vector<16x128xf32>
    %cst_38 = arith.constant 1.000000e+00 : f32
    %124 = vector.broadcast %cst_38 : f32 to vector<16x128xf32>
    %125 = arith.addf %124, %123 : vector<16x128xf32>
    %cst_39 = arith.constant 5.000000e-01 : f32
    %126 = vector.broadcast %cst_39 : f32 to vector<16x128xf32>
    %127 = arith.mulf %126, %125 : vector<16x128xf32>
    %128 = arith.mulf %115, %127 : vector<16x128xf32>
    %129 = arith.truncf %128 : vector<16x128xf32> to vector<16x128xbf16>
    %cst_40 = arith.constant dense<0.000000e+00> : vector<16x32xf32>
    %130 = tpu.matmul %129, %11, %cst_40 {dimension_numbers = #tpu.dot_dimension_numbers<[1], [1], [0], [0], [0, 0, 1, 0], [], []>} : vector<16x128xbf16>, vector<32x128xbf16>, vector<16x32xf32> -> vector<16x32xf32>
    %131 = arith.addf %89, %130 : vector<16x32xf32>
    %132 = vector.broadcast %5 : vector<1x32xf32> to vector<16x32xf32>
    %133 = arith.addf %131, %132 : vector<16x32xf32>
    %134 = arith.truncf %133 : vector<16x32xf32> to vector<16x32xbf16>
    %cst_41 = arith.constant dense<0.000000e+00> : vector<16x128xf32>
    %135 = tpu.matmul %134, %12, %cst_41 {dimension_numbers = #tpu.dot_dimension_numbers<[1], [0], [0], [1], [0, 0, 1, 1], [], []>} : vector<16x32xbf16>, vector<32x128xbf16>, vector<16x128xf32> -> vector<16x128xf32>
    %c0_42 = arith.constant 0 : index
    %c0_43 = arith.constant 0 : index
    %136 = vector.load %arg5[%c0_42, %c0_43] : memref<16x128xf32, #tpu.memory_space<vmem>>, vector<16x128xf32>
    tpu.vector_store %arg5[%c0_42, %c0_43], %135 {strides = array<i32>} : memref<16x128xf32, #tpu.memory_space<vmem>>, vector<16x128xf32>,
    %c0_44 = arith.constant 0 : index
    %c0_45 = arith.constant 0 : index
    %137 = vector.load %arg2[%c0_44, %c0_45] : memref<16x1xi32, #tpu.memory_space<vmem>>, vector<16x1xi32>
    %138 = vector.broadcast %137 : vector<16x1xi32> to vector<16x128xi32>
    %139 = arith.cmpi eq, %14, %138 : vector<16x128xi32>
    %cst_46 = arith.constant 1.000000e+00 : f32
    %cst_47 = arith.constant 0.000000e+00 : f32
    %140 = vector.broadcast %cst_46 : f32 to vector<16x128xf32>
    %141 = vector.broadcast %cst_47 : f32 to vector<16x128xf32>
    %142 = arith.select %139, %140, %141 : vector<16x128xi1>, vector<16x128xf32>
    %c1_i32 = arith.constant 1 : i32
    %143 = vector.broadcast %c1_i32 : i32 to vector<16x16xi32>
    %144 = arith.addi %54, %143 : vector<16x16xi32>
    %145 = arith.cmpi eq, %55, %144 : vector<16x16xi32>
    %146 = arith.andi %145, %60 : vector<16x16xi1>
    %cst_48 = arith.constant 1.000000e+00 : f32
    %cst_49 = arith.constant 0.000000e+00 : f32
    %147 = vector.broadcast %cst_48 : f32 to vector<16x16xf32>
    %148 = vector.broadcast %cst_49 : f32 to vector<16x16xf32>
    %149 = arith.select %146, %147, %148 : vector<16x16xi1>, vector<16x16xf32>
    %150 = arith.truncf %149 : vector<16x16xf32> to vector<16x16xbf16>
    %151 = arith.truncf %142 : vector<16x128xf32> to vector<16x128xbf16>
    %cst_50 = arith.constant dense<0.000000e+00> : vector<16x128xf32>
    %152 = tpu.matmul %150, %151, %cst_50 {dimension_numbers = #tpu.dot_dimension_numbers<[1], [0], [0], [1], [0, 0, 1, 1], [], []>} : vector<16x16xbf16>, vector<16x128xbf16>, vector<16x128xf32> -> vector<16x128xf32>
    %cst_51 = arith.constant dense<0xFF800000> : vector<16xf32>
    %153 = vector.multi_reduction <maximumf>, %135, %cst_51 [1] : vector<16x128xf32> to vector<16xf32>
    %154 = vector.shape_cast %153 : vector<16xf32> to vector<16x1xf32>
    %155 = vector.broadcast %154 : vector<16x1xf32> to vector<16x128xf32>
    %156 = arith.subf %135, %155 : vector<16x128xf32>
    %157 = math.exp %156 : vector<16x128xf32>
    %cst_52 = arith.constant dense<0.000000e+00> : vector<16xf32>
    %158 = vector.multi_reduction <add>, %157, %cst_52 [1] : vector<16x128xf32> to vector<16xf32>
    %159 = vector.shape_cast %158 : vector<16xf32> to vector<16x1xf32>
    %160 = math.log %159 : vector<16x1xf32>
    %161 = arith.addf %154, %160 : vector<16x1xf32>
    %162 = arith.mulf %152, %135 : vector<16x128xf32>
    %cst_53 = arith.constant dense<0.000000e+00> : vector<16xf32>
    %163 = vector.multi_reduction <add>, %162, %cst_53 [1] : vector<16x128xf32> to vector<16xf32>
    %164 = vector.shape_cast %163 : vector<16xf32> to vector<16x1xf32>
    %cst_54 = arith.constant dense<0.000000e+00> : vector<16xf32>
    %165 = vector.multi_reduction <add>, %152, %cst_54 [1] : vector<16x128xf32> to vector<16xf32>
    %166 = vector.shape_cast %165 : vector<16xf32> to vector<16x1xf32>
    %167 = arith.subf %161, %164 : vector<16x1xf32>
    %168 = arith.mulf %166, %167 : vector<16x1xf32>
    %169 = vector.shape_cast %166 : vector<16x1xf32> to vector<1x16x1xf32>
    %cst_55 = arith.constant dense<0.000000e+00> : vector<1xf32>
    %170 = vector.multi_reduction <add>, %169, %cst_55 [1, 2] : vector<1x16x1xf32> to vector<1xf32>
    %171 = vector.shape_cast %170 : vector<1xf32> to vector<1x1x1xf32>
    %172 = vector.extract %171[0, 0, 0] : f32 from vector<1x1x1xf32>
    %173 = vector.shape_cast %168 : vector<16x1xf32> to vector<1x16x1xf32>
    %cst_56 = arith.constant dense<0.000000e+00> : vector<1xf32>
    %174 = vector.multi_reduction <add>, %173, %cst_56 [1, 2] : vector<1x16x1xf32> to vector<1xf32>
    %175 = vector.shape_cast %174 : vector<1xf32> to vector<1x1x1xf32>
    %176 = vector.extract %175[0, 0, 0] : f32 from vector<1x1x1xf32>
    %cst_57 = arith.constant 1.000000e+00 : f32
    %177 = arith.maximumf %172, %cst_57 : f32
    %178 = arith.divf %176, %177 : f32
    %c0_58 = arith.constant 0 : index
    %179 = memref.load %arg6[%c0_58] : memref<1xf32, #tpu.memory_space<smem>>
    memref.store %178, %arg6[%c0_58] : memref<1xf32, #tpu.memory_space<smem>>
    return
  }
}

</mosaic_0001>

<bundles_post_ra>
// kernel: finetuner_forward.1
= control target key start
LH: loop header
LB: loop body
LE: loop exit
PB: predicated region body
PF: predicated region fallthrough
CT: control target
= control target key end

     0   :  { %12 = vsyncpa [#allocation3], 0  ;;  %s1372_s0 = inlined_call_operand.vmem [shape: s32[16,1], index: 0, kind: input, shape index: {}]   ;;  %s1373_s1 = inlined_call_operand.vmem [shape: s32[1,16], index: 1, kind: input, shape index: {}]   ;;  %s1374_s2 = inlined_call_operand.vmem [shape: s32[16,1], index: 2, kind: input, shape index: {}]   ;;  %s1375_s3 = inlined_call_operand.vmem [shape: f32[8,128], index: 3, kind: input, shape index: {}]   ;;  %s1376_s4 = inlined_call_operand.hbm [shape: bf16[32,1024], index: 4, kind: input, shape index: {}]   ;;  %s1377_s5 = inlined_call_operand.hbm [shape: f32[16,128], index: 5, kind: output, shape index: {0}]   ;;  %s1378_s6 = inlined_call_operand.hbm [shape: f32[1], index: 6, kind: output, shape index: {1}]  }
   0x1   :  { %13 = vsyncpa [#allocation4], 0 }
   0x2   :  { %14 = vsyncpa [#allocation5], 0  ;;  %s1120_s21 = smov [#allocation2]   ;;  %s1060_s25 = scalar_lea.hbm %s1376_s4, 2048 }
   0x3   :  { %s28_s22 = sshll.u32 %s1120_s21, 4  ;;  %p1061_p0 = scmp.ne.s32.totalorder %s1376_s4, %s1060_s25  ;;  %s29_s22 = int_to_ptr.vmem [resolvable:$true] %s28_s22 }
   0x4   :  { %p1064_p1 = scmp.lt.u32.totalorder %s1060_s25, %s1376_s4 }
   0x6   :  { %p1066_p2 = pnand %p1064_p1, %p1061_p0 }
   0x8   :  { %1069 = shalt.err (!%p1066_p2)
}
   0x9   :  { %s1070_s30 = scalar_lea.vmem %s29_s22, 2048  ;;  %p1075_p4 = scmp.lt.s32.totalorder %s29_s22, %s29_s22 }
   0xa   :  { %p1071_p3 = scmp.ne.s32.totalorder %s29_s22, %s1070_s30  ;;  %p1076_p5 = scmp.lt.s32.totalorder %s1070_s30, %s1070_s30 }
   0xc   :  { %p1077_p6 = por %p1076_p5, %p1075_p4 }
   0xe   :  { %p1078_p7 = pnand %p1077_p6, %p1071_p3 }
  0x10   :  { %1081 = shalt.err (!%p1078_p7)
}
  0x11   :  { %s1121_s7 = smov 512   ;;  %s1122_s8 = smov 32  }
  0x12   :  { %34 = dma.hbm_to_vmem [thread:$0]  %s1376_s4, 2048, %s29_s22, [#allocation3], %s1121_s7, %s1121_s7, %s1122_s8  }
  0x13   :  { %1114 = dma.done.wait [#allocation3], 2048  }
  0x14   :  { %1115 = vsyncadd [#allocation3], 4294965248  ;;  %v1123_v0 = vmov 0   ;;  %v1124_v1 = vmov 0.0   ;;  %v68_v2 = vld [vmem:[%s1372_s0] sm:$0xff]  ;;  %v69_v5 = vld [vmem:[%s1372_s0 + $0x8] sm:$0xff]  ;;  %v70_v10 = vlaneseq }
  0x15   :  { %1028 = vset.pattern.permute.xlu0 %v1123_v0  ;;  %944 = vmatprep.subr.bf16.mxu0 %v1124_v1  ;;  %v40_v3 = vld [vmem:[#allocation2] sm:$0xf]  ;;  %vm1125_vm0 = vmmov 0   ;;  %v1126_v14 = vmov 1.0|1.0   ;;  %vm136_vm4 = vcmask 261120  }
  0x16   :  { %244 = vmatprep.mubr.bf16.mxu1 %v1123_v0  ;;  %1029 = vset.pattern.permute.xlu1 %v1123_v0  ;;  %v41_v4 = vld [vmem:[#allocation2 + $0x20] sm:$0xf]  ;;  %v1193_v12 = vand.u32 127, %v70_v10  ;;  %v44_v31 = vld [vmem:[#allocation2 + $0x4] sm:$0xff]  ;;  %v1213_v45 = vshrl.u32 %v70_v10, 7 }
  0x17   :  { %73 = vperm.xlu0 %1028, %v68_v2   ;;  %v894_v6 = vcombine.low %v40_v3, %v41_v4  ;;  %v42_v7 = vld [vmem:[#allocation2 + $0x40] sm:$0xf]  ;;  %948 = vmatprep.mubr.msk.bf16.mxu0 %vm1125_vm0, %v1124_v1  ;;  %v46_v32 = vld [vmem:[#allocation2 + $0x24] sm:$0xff]  ;;  %v45_v57 = vld [vmem:[#allocation2 + $0xc] sm:$0xf] }
  0x18   :  { %v43_v8 = vld [vmem:[#allocation2 + $0x60] sm:$0xf]  ;;  %v899_v33 = vcombine.high %v44_v31, %v46_v32  ;;  %v898_v34 = vcombine.low %v44_v31, %v46_v32  ;;  %v48_v35 = vld [vmem:[#allocation2 + $0x44] sm:$0xff]  ;;  %v166_v46 = vsub.s32 0, %v1213_v45  ;;  %v172_v51 = vsub.s32 1, %v1213_v45 }
  0x19   :  { %945 = vmatpush3.bf16.xpose.msra.mxu0 %v894_v6  ;;  %v895_v9 = vcombine.low %v42_v7, %v43_v8  ;;  %v50_v36 = vld [vmem:[#allocation2 + $0x64] sm:$0xff]  ;;  %v47_v58 = vld [vmem:[#allocation2 + $0x2c] sm:$0xf]  ;;  %vm349_vm12 = vcmp.ge.s32.totalorder %v1213_v45, %v1193_v12 }
  0x1a   :  { %946 = vmatprep.subr.bf16.mxu0 %v1124_v1  ;;  %212 = vmatprep.subr.bf16.mxu1 %v899_v33  ;;  %v902_v37 = vcombine.high %v48_v35, %v50_v36  ;;  %v901_v38 = vcombine.low %v48_v35, %v50_v36  ;;  %v1219_v47 = vld [vmem:[%s1375_s3] sm:$0xff]  ;;  %v900_v61 = vcombine.low %v45_v57, %v47_v58  ;;  %v49_v63 = vld [vmem:[#allocation2 + $0x4c] sm:$0xf]  ;;  %v52_v57 = vld [vmem:[#allocation2 + $0x10] sm:$0xf] }
  0x1b   :  { %76 = vperm.xlu0 %1028, %v69_v5   ;;  %213 = vmatpush1.bf16.msra.mxu1 %v898_v34  ;;  %v167_v50 = vrot.slane %v1219_v47, %v166_v46  ;;  %v173_v55 = vrot.slane %v1219_v47, %v172_v51  ;;  %v51_v2 = vld [vmem:[#allocation2 + $0x6c] sm:$0xf]  ;;  %v53_v58 = vld [vmem:[#allocation2 + $0x30] sm:$0xf] }
  0x1c   :  { %214 = vmatprep.subr.bf16.mxu1 %v902_v37  ;;  %v903_v3 = vcombine.low %v49_v63, %v51_v2 }
  0x1f   :  { %215 = vmatpush1.bf16.msra.mxu1 %v901_v38 }
  0x20   :  { %952 = vmatprep.subr.bf16.mxu1 %v1124_v1 }
  0x21   :  { %947 = vmatpush3.bf16.xpose.msra.mxu0 %v895_v9 }
  0x22   :  { %960 = vmatprep.subr.bf16.mxu0 %v1124_v1 }
  0x96   :  { %v74_v11 = vpop.permute.xlu0 %73 }
  0x97   :  { %vm78_vm1 = vcmp.eq.s32.totalorder %v1193_v12, %v74_v11 }
  0x9a   :  { %v77_v13 = vpop.permute.xlu0 %76 }
  0x9b   :  { %vm79_vm2 = vcmp.eq.s32.totalorder %v1193_v12, %v77_v13 }
  0x9c   :  { %vm896_vm3 = vmpackc.low %vm79_vm2, %vm78_vm1 }
  0x9d   :  { %949 = vmatmul.mubr.msk.bf16.vlgmr.msra.gmra.mrb[0].mxu0 %vm896_vm3, %v1126_v14  ;;  %vm365_vm3 = vcmask 130048  }
  0x9e   :  { %962 = vmatprep.mubr.msk.bf16.mxu0 %vm1125_vm0, %v1124_v1 }
 0x170   :  { %v1200_v15 = vpop.f32.mrb[0].mxu0 }
 0x171   :  { %v950_v16 = vpop.f32.mrb[1].mxu0  ;;  %v137_v17 = vsel %vm136_vm4, %v1200_v15, 0.0 }
 0x172   :  { %138 = vadd.xlane.f32.xlu1 %v137_v17  ;;  %v1204_v18 = vpop.f32.mrb[2].mxu0 }
 0x173   :  { %v951_v19 = vpop.f32.mrb[3].mxu0  ;;  %v140_v20 = vsel %vm136_vm4, %v1204_v18, 0.0 }
 0x174   :  { %v343_v19 = vadd.s32 8, %v1213_v45 }
 0x176   :  { %141 = vadd.xlane.f32.xlu1 %v140_v20  ;;  %v344_v20 = vshrl.u32 %v1213_v45, 3  ;;  %vm350_vm13 = vcmp.ge.s32.totalorder %v343_v19, %v1193_v12 }
 0x1ff   :  { %v139_v21 = vpop.xlane.xlu1 %138 }
 0x200   :  { %v144_v22 = vmul.f32 0.03125, %v139_v21  ;;  %v346_v21 = vshrl.u32 %v1193_v12, 3 }
 0x202   :  { %v146_v23 = vsub.f32 %v1200_v15, %v144_v22  ;;  %v744_v22 = vadd.s32 1, %v1213_v45  ;;  %vm1242_vm5 = vcmp.eq.s32.totalorder %v344_v20, %v346_v21 }
 0x203   :  { %v142_v24 = vpop.xlane.xlu1 %141  ;;  %vm353_vm14 = vmand %vm1242_vm5, %vm349_vm12 }
 0x204   :  { %v145_v25 = vmul.f32 0.03125, %v142_v24  ;;  %v148_v26 = vmul.f32 %v146_v23, %v146_v23  ;;  %vm746_vm6 = vcmp.eq.s32.totalorder %v1193_v12, %v744_v22 }
 0x205   :  { %vm748_vm7 = vmand %vm746_vm6, %vm1242_vm5 }
 0x206   :  { %v147_v27 = vsub.f32 %v1204_v18, %v145_v25  ;;  %v150_v28 = vsel %vm136_vm4, %v148_v26, 0.0  ;;  %v745_v25 = vadd.s32 1, %v343_v19  ;;  %v1250_v26 = vsel %vm748_vm7, 1.0, %v1124_v1 }
 0x207   :  { %151 = vadd.xlane.f32.xlu0 %v150_v28 }
 0x208   :  { %v149_v29 = vmul.f32 %v147_v27, %v147_v27  ;;  %vm747_vm9 = vcmp.eq.s32.totalorder %v1193_v12, %v745_v25 }
 0x20a   :  { %v153_v30 = vsel %vm136_vm4, %v149_v29, 0.0  ;;  %v351_v29 = vld [vmem:[%s1373_s1] sm:$0x1] }
 0x20b   :  { %154 = vadd.xlane.f32.xlu1 %v153_v30  ;;  %vm352_vm11 = vcmp.gt.s32.totalorder %v351_v29, 0 }
 0x20c   :  { %v355_v30 = vsel %vm352_vm11, 1, %v1123_v0 }
 0x20d   :  { %v359_v31 = vrot.slane %v355_v30, %v166_v46 }
 0x20f   :  { %vm360_vm15 = vcmp.eq.s32.totalorder %v359_v31, 1 }
 0x210   :  { %vm1269_vm2 = vmand %vm353_vm14, %vm360_vm15 }
 0x294   :  { %v152_v39 = vpop.xlane.xlu0 %151 }
 0x295   :  { %v156_v40 = vmul.f32 0.03125, %v152_v39 }
 0x297   :  { %v158_v41 = vadd.f32 1e-05, %v156_v40 }
 0x298   :  { %v155_v42 = vpop.xlane.xlu1 %154 }
 0x299   :  { %1030 = vrsqrt.f32 %v158_v41  ;;  %v157_v43 = vmul.f32 0.03125, %v155_v42 }
 0x29b   :  { %v159_v44 = vadd.f32 1e-05, %v157_v43 }
 0x29d   :  { %1032 = vrsqrt.f32 %v159_v44 }
 0x2a3   :  { %v1031_v48 = vpop.eup %1030 }
 0x2a4   :  { %v162_v49 = vmul.f32 %v1031_v48, %v146_v23  ;;  %v345_v23 = vshrl.u32 %v343_v19, 3 }
 0x2a6   :  { %v168_v54 = vmul.f32 %v167_v50, %v162_v49  ;;  %vm348_vm8 = vcmp.eq.s32.totalorder %v345_v23, %v346_v21 }
 0x2a7   :  { %v1033_v52 = vpop.eup %1032  ;;  %vm749_vm10 = vmand %vm747_vm9, %vm348_vm8 }
 0x2a8   :  { %v163_v53 = vmul.f32 %v1033_v52, %v147_v27  ;;  %v174_v59 = vadd.f32 %v173_v55, %v168_v54  ;;  %v1254_v27 = vsel %vm749_vm10, 1.0, %v1124_v1  ;;  %vm354_vm1 = vmand %vm348_vm8, %vm350_vm13 }
 0x2a9   :  { %v752_v28 = vpack.c.bf16 %v1254_v27, %v1250_v26  ;;  %vm1273_vm6 = vmand %vm354_vm1, %vm360_vm15 }
 0x2aa   :  { %v169_v56 = vmul.f32 %v167_v50, %v163_v53 }
 0x2ac   :  { %v175_v60 = vadd.f32 %v173_v55, %v169_v56 }
 0x2ae   :  { %v176_v62 = vpack.c.bf16 %v175_v60, %v174_v59  ;;  %v907_v59 = vcombine.low %v52_v57, %v53_v58  ;;  %v54_v60 = vld [vmem:[#allocation2 + $0x50] sm:$0xf]  ;;  %v528_v57 = vsub.s32 3, %v1213_v45 }
 0x2b0   :  { %904 = vmatmul.mubr.msk.bf16.vlgmr.msra.gmra.mrb[0].mxu1 %vm136_vm4, %v176_v62 }
 0x2b1   :  { %953 = vmatpush3.bf16.msra.mxu1 %v900_v61  ;;  %956 = vmatprep.mubr.msk.bf16.mxu1 %vm1125_vm0, %v1124_v1  ;;  %v55_v61 = vld [vmem:[#allocation2 + $0x70] sm:$0xf] }
 0x2b2   :  { %954 = vmatprep.subr.bf16.mxu1 %v1124_v1 }
 0x2b5   :  { %955 = vmatpush3.bf16.msra.mxu1 %v903_v3 }
 0x2b6   :  { %966 = vmatprep.subr.bf16.mxu1 %v1124_v1 }
 0x2b8   :  { %957 = vmatmul.mubr.msk.bf16.vlgmr.msra.gmra.mrb[4].mxu1 %vm136_vm4, %v176_v62  ;;  %v908_v62 = vcombine.low %v54_v60, %v55_v61  ;;  %v529_v61 = vrot.slane %v1219_v47, %v528_v57 }
 0x2b9   :  { %968 = vmatprep.mubr.msk.bf16.mxu1 %vm1125_vm0, %v1124_v1 }
 0x383   :  { %v246_v4 = vpop.f32.mrb[0].mxu1 }
 0x384   :  { %v248_v5 = vpop.f32.mrb[1].mxu1 }
 0x385   :  { %v250_v6 = vpop.f32.mrb[2].mxu1 }
 0x386   :  { %v296_v7 = vpack.c.bf16 %v250_v6, %v246_v4  ;;  %v252_v8 = vpop.f32.mrb[3].mxu1 }
 0x387   :  { %v297_v9 = vpack.c.bf16 %v252_v8, %v248_v5 }
 0x389   :  { %961 = vmatpush3.bf16.xpose.msra.mxu0 %v297_v9 }
 0x38a   :  { %972 = vmatprep.subr.bf16.mxu0 %v1124_v1 }
 0x38b   :  { %v289_v10 = vpop.f32.mrb[4].mxu1 }
 0x38c   :  { %v958_v11 = vpop.f32.mrb[5].mxu1 }
 0x38d   :  { %v292_v13 = vpop.f32.mrb[6].mxu1 }
 0x38e   :  { %v393_v16 = vpack.c.bf16 %v292_v13, %v289_v10  ;;  %v959_v17 = vpop.f32.mrb[7].mxu1 }
 0x390   :  { %963 = vmatmul.mubr.bf16.vlgmr.msra.gmra.mrb[4].mxu0 %v296_v7  ;;  %967 = vmatpush3.bf16.msra.mxu1 %v393_v16 }
 0x391   :  { %976 = vmatprep.mubr.msk.bf16.mxu0 %vm1125_vm0, %v1124_v1  ;;  %980 = vmatprep.subr.bf16.mxu1 %v1124_v1 }
 0x392   :  { %973 = vmatpush3.bf16.xpose.msra.mxu0 %v907_v59 }
 0x393   :  { %974 = vmatprep.subr.bf16.mxu0 %v1124_v1 }
 0x39a   :  { %975 = vmatpush3.bf16.xpose.msra.mxu0 %v908_v62 }
 0x39b   :  { %996 = vmatprep.subr.bf16.mxu0 %v1124_v1 }
 0x463   :  { %v332_v32 = vpop.f32.mrb[4].mxu0 }
 0x464   :  { %v339_v34 = vmul.f32 0.17677669, %v332_v32  ;;  %v964_v0 = vpop.f32.mrb[5].mxu0 }
 0x465   :  { %v335_v35 = vpop.f32.mrb[6].mxu0 }
 0x466   :  { %v340_v37 = vmul.f32 0.17677669, %v335_v35  ;;  %v965_v38 = vpop.f32.mrb[7].mxu0  ;;  %v363_v39 = vsel %vm1269_vm2, %v339_v34, -1e+30 }
 0x467   :  { %v366_v40 = vsel %vm365_vm3, %v363_v39, -inf  ;;  %v733_v38 = vld [vmem:[%s1374_s2 + $0x8] sm:$0xff] }
 0x468   :  { %367 = vmax.xlane.f32.xlu1 %v366_v40  ;;  %v364_v41 = vsel %vm1273_vm6, %v340_v37, -1e+30  ;;  %v732_v37 = vld [vmem:[%s1374_s2] sm:$0xff]  ;;  %v57_v40 = vld [vmem:[#allocation2 + $0x34] sm:$0xf]  ;;  %s1127_s2 = smov [#allocation6]  }
 0x469   :  { %v369_v42 = vsel %vm365_vm3, %v364_v41, -inf  ;;  %s869_s19 = sshll.u32 %s1127_s2, 4  ;;  %s870_s19 = int_to_ptr.vmem [resolvable:$true] %s869_s19 }
 0x46a   :  { %s1082_s20 = scalar_lea.vmem %s870_s19, 256  ;;  %p1087_p9 = scmp.lt.s32.totalorder %s870_s19, %s870_s19 }
 0x46b   :  { %p1083_p8 = scmp.ne.s32.totalorder %s870_s19, %s1082_s20  ;;  %p1088_p10 = scmp.lt.s32.totalorder %s1082_s20, %s1082_s20 }
 0x46c   :  { %370 = vmax.xlane.f32.xlu1 %v369_v42  ;;  %v58_v42 = vld [vmem:[#allocation2 + $0x54] sm:$0xf] }
 0x46d   :  { %p1089_p11 = por %p1088_p10, %p1087_p9 }
 0x46f   :  { %p1090_p12 = pnand %p1089_p11, %p1083_p8 }
 0x4f5   :  { %v368_v43 = vpop.xlane.xlu1 %367 }
 0x4f6   :  { %v372_v44 = vsub.f32 %v363_v39, %v368_v43  ;;  %v56_v39 = vld [vmem:[#allocation2 + $0x14] sm:$0xf] }
 0x4f7   :  { %v59_v43 = vld [vmem:[#allocation2 + $0x74] sm:$0xf] }
 0x4f8   :  { %v374_v46 = vmul.f32 1.442695, %v372_v44  ;;  %v910_v44 = vcombine.low %v58_v42, %v59_v43  ;;  %v64_v43 = vld [vmem:[#allocation2 + $0x1c] sm:$0xf] }
 0x4f9   :  { %v371_v48 = vpop.xlane.xlu1 %370 }
 0x4fa   :  { %1034 = vpow2.f32 %v374_v46  ;;  %v373_v49 = vsub.f32 %v364_v41, %v371_v48  ;;  %v909_v41 = vcombine.low %v56_v39, %v57_v40 }
 0x4fc   :  { %v376_v50 = vmul.f32 1.442695, %v373_v49 }
 0x4fe   :  { %1036 = vpow2.f32 %v376_v50 }
 0x504   :  { %v1035_v51 = vpop.eup %1034 }
 0x505   :  { %v378_v52 = vsel %vm1269_vm2, %v1035_v51, 0.0 }
 0x506   :  { %v380_v53 = vsel %vm365_vm3, %v378_v52, 0.0 }
 0x507   :  { %381 = vadd.xlane.f32.xlu1 %v380_v53  ;;  %v522_v53 = vsub.s32 2, %v1213_v45 }
 0x508   :  { %v1037_v54 = vpop.eup %1036 }
 0x509   :  { %v379_v55 = vsel %vm1273_vm6, %v1037_v54, 0.0 }
 0x50a   :  { %v383_v56 = vsel %vm365_vm3, %v379_v55, 0.0 }
 0x50b   :  { %384 = vadd.xlane.f32.xlu1 %v383_v56 }
 0x594   :  { %v382_v63 = vpop.xlane.xlu1 %381 }
 0x595   :  { %v386_v2 = vmax.f32 %v382_v63, 1e-30 }
 0x597   :  { %1038 = vrcp.f32 %v386_v2 }
 0x598   :  { %v385_v3 = vpop.xlane.xlu1 %384 }
 0x599   :  { %v387_v4 = vmax.f32 %v385_v3, 1e-30 }
 0x59b   :  { %1040 = vrcp.f32 %v387_v4  ;;  %v60_v4 = vld [vmem:[#allocation2 + $0x18] sm:$0xf] }
 0x5a1   :  { %v1039_v5 = vpop.eup %1038 }
 0x5a2   :  { %v390_v7 = vmul.f32 %v1039_v5, %v378_v52  ;;  %v61_v5 = vld [vmem:[#allocation2 + $0x38] sm:$0xf] }
 0x5a5   :  { %v1041_v6 = vpop.eup %1040 }
 0x5a6   :  { %v391_v8 = vmul.f32 %v1041_v6, %v379_v55  ;;  %v523_v55 = vrot.slane %v1219_v47, %v522_v53  ;;  %v912_v6 = vcombine.low %v60_v4, %v61_v5 }
 0x5a8   :  { %v392_v9 = vpack.c.bf16 %v391_v8, %v390_v7  ;;  %v62_v7 = vld [vmem:[#allocation2 + $0x58] sm:$0xf] }
 0x5a9   :  { %v63_v8 = vld [vmem:[#allocation2 + $0x78] sm:$0xf] }
 0x5aa   :  { %969 = vmatmul.mubr.msk.bf16.vlgmr.msra.gmra.mrb[8].mxu1 %vm365_vm3, %v392_v9  ;;  %v913_v9 = vcombine.low %v62_v7, %v63_v8 }
 0x5ab   :  { %984 = vmatprep.mubr.msk.bf16.mxu1 %vm1125_vm0, %v1124_v1  ;;  %981 = vmatpush3.bf16.msra.mxu1 %v909_v41 }
 0x5ac   :  { %982 = vmatprep.subr.bf16.mxu1 %v1124_v1 }
 0x5af   :  { %983 = vmatpush3.bf16.msra.mxu1 %v910_v44  ;;  %v65_v44 = vld [vmem:[#allocation2 + $0x3c] sm:$0xf] }
 0x5b0   :  { %988 = vmatprep.subr.bf16.mxu1 %v1124_v1 }
 0x67d   :  { %v431_v10 = vpop.f32.mrb[8].mxu1 }
 0x67e   :  { %v970_v11 = vpop.f32.mrb[9].mxu1 }
 0x67f   :  { %v434_v13 = vpop.f32.mrb[10].mxu1 }
 0x680   :  { %v438_v16 = vpack.c.bf16 %v434_v13, %v431_v10  ;;  %v971_v17 = vpop.f32.mrb[11].mxu1  ;;  %v535_v10 = vsub.s32 5, %v1213_v45 }
 0x682   :  { %977 = vmatmul.mubr.bf16.vlgmr.msra.gmra.mrb[8].mxu0 %v438_v16  ;;  %v536_v11 = vrot.slane %v1219_v47, %v535_v10 }
 0x683   :  { %1000 = vmatprep.mubr.msk.bf16.mxu0 %vm1125_vm0, %v1124_v1 }
 0x755   :  { %v485_v19 = vpop.f32.mrb[8].mxu0 }
 0x756   :  { %v1297_v20 = vadd.f32 %v485_v19, %v1200_v15  ;;  %v978_v21 = vpop.f32.mrb[9].mxu0 }
 0x757   :  { %v488_v22 = vpop.f32.mrb[10].mxu0 }
 0x758   :  { %v1300_v23 = vadd.f32 %v488_v22, %v1204_v18  ;;  %v979_v24 = vpop.f32.mrb[11].mxu0  ;;  %v494_v25 = vsel %vm136_vm4, %v1297_v20, 0.0 }
 0x759   :  { %495 = vadd.xlane.f32.xlu1 %v494_v25 }
 0x75a   :  { %v497_v29 = vsel %vm136_vm4, %v1300_v23, 0.0 }
 0x75d   :  { %498 = vadd.xlane.f32.xlu1 %v497_v29 }
 0x7e6   :  { %v496_v30 = vpop.xlane.xlu1 %495 }
 0x7e7   :  { %v500_v31 = vmul.f32 0.03125, %v496_v30 }
 0x7e9   :  { %v502_v32 = vsub.f32 %v1297_v20, %v500_v31 }
 0x7ea   :  { %v499_v15 = vpop.xlane.xlu1 %498 }
 0x7eb   :  { %v501_v33 = vmul.f32 0.03125, %v499_v15  ;;  %v504_v34 = vmul.f32 %v502_v32, %v502_v32 }
 0x7ed   :  { %v503_v0 = vsub.f32 %v1300_v23, %v501_v33  ;;  %v506_v18 = vsel %vm136_vm4, %v504_v34, 0.0 }
 0x7ee   :  { %507 = vadd.xlane.f32.xlu1 %v506_v18 }
 0x7ef   :  { %v505_v35 = vmul.f32 %v503_v0, %v503_v0 }
 0x7f1   :  { %v509_v36 = vsel %vm136_vm4, %v505_v35, 0.0 }
 0x7f2   :  { %510 = vadd.xlane.f32.xlu0 %v509_v36 }
 0x7ff   :  { %735 = vperm.xlu1 %1029, %v732_v37  }
 0x808   :  { %738 = vperm.xlu0 %1028, %v733_v38  }
 0x87b   :  { %v508_v46 = vpop.xlane.xlu1 %507 }
 0x87c   :  { %v512_v48 = vmul.f32 0.03125, %v508_v46  ;;  %v914_v46 = vcombine.low %v64_v43, %v65_v44 }
 0x87e   :  { %v514_v49 = vadd.f32 1e-05, %v512_v48  ;;  %997 = vmatpush3.bf16.msra.mxu0 %v914_v46  ;;  %v66_v48 = vld [vmem:[#allocation2 + $0x5c] sm:$0xf] }
 0x87f   :  { %v511_v50 = vpop.xlane.xlu0 %510  ;;  %998 = vmatprep.subr.bf16.mxu0 %v1124_v1 }
 0x880   :  { %1042 = vrsqrt.f32 %v514_v49  ;;  %v513_v51 = vmul.f32 0.03125, %v511_v50  ;;  %v67_v49 = vld [vmem:[#allocation2 + $0x7c] sm:$0xf] }
 0x881   :  { %v915_v50 = vcombine.low %v66_v48, %v67_v49 }
 0x882   :  { %v515_v52 = vadd.f32 1e-05, %v513_v51  ;;  %v669_v51 = vsub.s32 4, %v1213_v45 }
 0x883   :  { %999 = vmatpush3.bf16.msra.mxu0 %v915_v50 }
 0x884   :  { %1044 = vrsqrt.f32 %v515_v52  ;;  %1004 = vmatprep.subr.bf16.mxu0 %v1124_v1 }
 0x88a   :  { %v1043_v54 = vpop.eup %1042 }
 0x88b   :  { %v518_v56 = vmul.f32 %v1043_v54, %v502_v32  ;;  %v670_v54 = vrot.slane %v1219_v47, %v669_v51 }
 0x88d   :  { %v524_v59 = vmul.f32 %v523_v55, %v518_v56  ;;  %v736_v56 = vpop.permute.xlu1 %735 }
 0x88e   :  { %v1045_v58 = vpop.eup %1044  ;;  %vm740_vm7 = vcmp.eq.s32.totalorder %v1193_v12, %v736_v56 }
 0x88f   :  { %v519_v60 = vmul.f32 %v1045_v58, %v503_v0  ;;  %v530_v63 = vadd.f32 %v529_v61, %v524_v59  ;;  %v739_v58 = vpop.permute.xlu0 %738 }
 0x890   :  { %vm741_vm5 = vcmp.eq.s32.totalorder %v1193_v12, %v739_v58 }
 0x891   :  { %v525_v62 = vmul.f32 %v523_v55, %v519_v60  ;;  %vm917_vm8 = vmpackc.low %vm741_vm5, %vm740_vm7 }
 0x893   :  { %v531_v2 = vadd.f32 %v529_v61, %v525_v62 }
 0x895   :  { %v532_v3 = vpack.c.bf16 %v531_v2, %v530_v63 }
 0x897   :  { %985 = vmatmul.mubr.msk.bf16.vlgmr.msra.gmra.mrb[12].mxu1 %vm136_vm4, %v532_v3 }
 0x898   :  { %992 = vmatprep.mubr.msk.bf16.mxu1 %vm1125_vm0, %v1124_v1  ;;  %989 = vmatpush3.bf16.xpose.msra.mxu1 %v912_v6 }
 0x899   :  { %990 = vmatprep.subr.bf16.mxu1 %v1124_v1 }
 0x8a0   :  { %991 = vmatpush3.bf16.xpose.msra.mxu1 %v913_v9 }
 0x96a   :  { %v586_v13 = vpop.f32.mrb[12].mxu1 }
 0x96b   :  { %v587_v16 = vadd.f32 %v586_v13, %v536_v11  ;;  %v986_v17 = vpop.f32.mrb[13].mxu1 }
 0x96c   :  { %v589_v19 = vpop.f32.mrb[14].mxu1 }
 0x96d   :  { %v593_v21 = vmul.f32 %v587_v16, %v587_v16  ;;  %v590_v22 = vadd.f32 %v589_v19, %v536_v11  ;;  %v987_v24 = vpop.f32.mrb[15].mxu1 }
 0x96f   :  { %v595_v25 = vmul.f32 %v593_v21, %v587_v16  ;;  %v594_v29 = vmul.f32 %v590_v22, %v590_v22 }
 0x971   :  { %v597_v30 = vmul.f32 0.044715, %v595_v25  ;;  %v596_v31 = vmul.f32 %v594_v29, %v590_v22 }
 0x973   :  { %v599_v32 = vadd.f32 %v597_v30, %v587_v16  ;;  %v598_v15 = vmul.f32 0.044715, %v596_v31 }
 0x975   :  { %v601_v33 = vmul.f32 0.7978846, %v599_v32  ;;  %v600_v34 = vadd.f32 %v598_v15, %v590_v22 }
 0x977   :  { %1046 = vtanh.f32 %v601_v33  ;;  %v602_v0 = vmul.f32 0.7978846, %v600_v34 }
 0x979   :  { %1048 = vtanh.f32 %v602_v0 }
 0x981   :  { %v1047_v18 = vpop.eup %1046 }
 0x982   :  { %v605_v35 = vadd.f32 1.0, %v1047_v18 }
 0x983   :  { %v1049_v36 = vpop.eup %1048 }
 0x984   :  { %v607_v37 = vmul.f32 0.5, %v605_v35  ;;  %v606_v38 = vadd.f32 1.0, %v1049_v36 }
 0x986   :  { %v608_v39 = vmul.f32 0.5, %v606_v38  ;;  %v609_v40 = vmul.f32 %v607_v37, %v587_v16 }
 0x988   :  { %v610_v41 = vmul.f32 %v608_v39, %v590_v22 }
 0x98a   :  { %v611_v42 = vpack.c.bf16 %v610_v41, %v609_v40 }
 0x98c   :  { %993 = vmatmul.mubr.bf16.vlgmr.msra.gmra.mrb[16].mxu1 %v611_v42 }
 0xa5f   :  { %v658_v52 = vpop.f32.mrb[16].mxu1 }
 0xa60   :  { %v665_v53 = vadd.f32 %v658_v52, %v1297_v20  ;;  %v994_v55 = vpop.f32.mrb[17].mxu1 }
 0xa61   :  { %v661_v57 = vpop.f32.mrb[18].mxu1 }
 0xa62   :  { %v666_v59 = vadd.f32 %v661_v57, %v1300_v23  ;;  %v995_v60 = vpop.f32.mrb[19].mxu1  ;;  %v671_v61 = vadd.f32 %v670_v54, %v665_v53 }
 0xa64   :  { %v672_v62 = vadd.f32 %v670_v54, %v666_v59 }
 0xa66   :  { %v673_v63 = vpack.c.bf16 %v672_v62, %v671_v61 }
 0xa68   :  { %1001 = vmatmul.mubr.msk.bf16.vlgmr.msra.gmra.mrb[12].mxu0 %vm136_vm4, %v673_v63 }
 0xa69   :  { %1005 = vmatpush3.bf16.msk.msra.mxu0 %vm917_vm8, %v1126_v14  ;;  %1006 = vmatprep.mubr.msk.bf16.mxu0 %vm1125_vm0, %v1124_v1  ;;  %vm832_vm0 = vcmask 7168  }
 0xa70   :  { %1007 = vmatmul.mubr.msk.bf16.vlgmr.msra.gmra.mrb[16].mxu0 %vm365_vm3, %v752_v28 }
 0xb3b   :  { %v723_v45 = vpop.f32.mrb[12].mxu0 }
 0xb3c   :  { %730 = vst [vmem:[#allocation6] sm:$0xff] %v723_v45  ;;  %798 = vmax.xlane.f32.xlu1 %v723_v45  ;;  %v1002_v47 = vpop.f32.mrb[13].mxu0 }
 0xb3d   :  { %v726_v20 = vpop.f32.mrb[14].mxu0 }
 0xb3e   :  { %731 = vst [vmem:[#allocation6 + $0x8] sm:$0xff] %v726_v20  ;;  %800 = vmax.xlane.f32.xlu0 %v726_v20  ;;  %v1003_v12 = vpop.f32.mrb[15].mxu0 }
 0xb43   :  { %v791_v23 = vpop.f32.mrb[16].mxu0 }
 0xb44   :  { %v1008_v2 = vpop.f32.mrb[17].mxu0  ;;  %824 = vadd.xlane.f32.xlu1 %v791_v23  ;;  %v818_v14 = vmul.f32 %v791_v23, %v723_v45 }
 0xb45   :  { %v794_v3 = vpop.f32.mrb[18].mxu0 }
 0xb46   :  { %826 = vadd.xlane.f32.xlu0 %v794_v3  ;;  %v1009_v1 = vpop.f32.mrb[19].mxu0  ;;  %v819_v4 = vmul.f32 %v794_v3, %v726_v20 }
 0xbc9   :  { %v799_v5 = vpop.xlane.xlu1 %798 }
 0xbca   :  { %v802_v26 = vsub.f32 %v723_v45, %v799_v5 }
 0xbcb   :  { %v801_v27 = vpop.xlane.xlu0 %800 }
 0xbcc   :  { %v804_v28 = vmul.f32 1.442695, %v802_v26  ;;  %v803_v6 = vsub.f32 %v726_v20, %v801_v27 }
 0xbce   :  { %1050 = vpow2.f32 %v804_v28  ;;  %v806_v7 = vmul.f32 1.442695, %v803_v6 }
 0xbd0   :  { %1052 = vpow2.f32 %v806_v7 }
 0xbd1   :  { %v825_v8 = vpop.xlane.xlu1 %824 }
 0xbd2   :  { %v833_v13 = vsel %vm832_vm0, %v825_v8, 0.0 }
 0xbd3   :  { %v827_v9 = vpop.xlane.xlu0 %826 }
 0xbd4   :  { %v834_v16 = vsel %vm832_vm0, %v827_v9, 0.0 }
 0xbd5   :  { %v835_v17 = vadd.f32 %v834_v16, %v833_v13 }
 0xbd8   :  { %v1051_v10 = vpop.eup %1050 }
 0xbd9   :  { %808 = vadd.xlane.f32.xlu1 %v1051_v10 }
 0xbda   :  { %v1053_v11 = vpop.eup %1052 }
 0xbdb   :  { %810 = vadd.xlane.f32.xlu0 %v1053_v11 }
 0xbdd   :  { %820 = vadd.xlane.f32.xlu1 %v818_v14 }
 0xbdf   :  { %822 = vadd.xlane.f32.xlu0 %v819_v4 }
 0xbe1   :  { %836 = vadd.xlane.f32.xlu1 %v835_v17 }
 0xc66   :  { %v809_v19 = vpop.xlane.xlu1 %808 }
 0xc67   :  { %1054 = vlog2.f32 %v809_v19 }
 0xc68   :  { %v811_v21 = vpop.xlane.xlu0 %810 }
 0xc69   :  { %1056 = vlog2.f32 %v811_v21 }
 0xc6a   :  { %v821_v22 = vpop.xlane.xlu1 %820 }
 0xc6c   :  { %v823_v36 = vpop.xlane.xlu0 %822 }
 0xc6e   :  { %v837_v24 = vpop.xlane.xlu1 %836 }
 0xc6f   :  { %v838_v25 = vrot.slane %v837_v24, 4 }
 0xc71   :  { %v1055_v29 = vpop.eup %1054  ;;  %v839_v30 = vadd.f32 %v838_v25, %v837_v24 }
 0xc72   :  { %v813_v31 = vmul.f32 0.6931472, %v1055_v29 }
 0xc73   :  { %v1057_v32 = vpop.eup %1056  ;;  %v840_v15 = vrot.slane %v839_v30, 2 }
 0xc74   :  { %v815_v33 = vmul.f32 0.6931472, %v1057_v32  ;;  %v816_v34 = vadd.f32 %v813_v31, %v799_v5 }
 0xc75   :  { %v841_v0 = vadd.f32 %v840_v15, %v839_v30 }
 0xc76   :  { %v828_v18 = vsub.f32 %v816_v34, %v821_v22  ;;  %v817_v35 = vadd.f32 %v815_v33, %v801_v27 }
 0xc77   :  { %v842_v37 = vrot.slane %v841_v0, 1 }
 0xc78   :  { %v830_v38 = vmul.f32 %v828_v18, %v825_v8  ;;  %v829_v39 = vsub.f32 %v817_v35, %v823_v36 }
 0xc79   :  { %v843_v40 = vadd.f32 %v842_v37, %v841_v0 }
 0xc7a   :  { %v831_v41 = vmul.f32 %v829_v39, %v827_v9  ;;  %v845_v42 = vsel %vm832_vm0, %v830_v38, 0.0 }
 0xc7b   :  { %1010 = vpush %v843_v40 }
 0xc7c   :  { %v846_v43 = vsel %vm832_vm0, %v831_v41, 0.0 }
 0xc7d   :  { %v847_v44 = vadd.f32 %v846_v43, %v845_v42 }
 0xc7f   :  { %848 = vadd.xlane.f32.xlu0 %v847_v44 }
 0xc80   :  { %1093 = shalt.err (!%p1090_p12)
}
 0xc81   :  { %s1094_s23 = scalar_lea.hbm %s1377_s5, 256 }
 0xc82   :  { %p1095_p13 = scmp.ne.s32.totalorder %s1377_s5, %s1094_s23  ;;  %p1098_p0 = scmp.lt.u32.totalorder %s1094_s23, %s1377_s5 }
 0xc84   :  { %p1100_p1 = pnand %p1098_p0, %p1095_p13 }
 0xc86   :  { %1103 = shalt.err (!%p1100_p1)
}
 0xc87   :  { %s1128_s28 = smov 128   ;;  %s1129_s29 = smov 8  }
 0xc88   :  { %875 = dma.vmem_to_hbm [thread:$0]  %s870_s19, 256, %s1377_s5, [#allocation4], %s1128_s28, %s1128_s28, %s1129_s29  }
 0xc89   :  { %s1130_s9 = smov 1.0   ;;  %s1104_s0 = scalar_lea.hbm %s1378_s6, 16 }
 0xc8a   :  { %p1105_p2 = scmp.ne.s32.totalorder %s1378_s6, %s1104_s0  ;;  %p1108_p3 = scmp.lt.u32.totalorder %s1104_s0, %s1378_s6 }
 0xc8c   :  { %p1110_p4 = pnand %p1108_p3, %p1105_p2 }
 0xcac   :  { %s1011_s8 = spop %1010 }
 0xcad   :  { %s857_s10 = smax.f32 %s1130_s9, %s1011_s8 }
 0xcae   :  { %v858_v46 = vstv %s857_s10 }
 0xcaf   :  { %1058 = vrcp.f32 %v858_v46 }
 0xcb9   :  { %v1059_v55 = vpop.eup %1058 }
 0xd0c   :  { %v849_v48 = vpop.xlane.xlu0 %848 }
 0xd0d   :  { %v850_v49 = vrot.slane %v849_v48, 4 }
 0xd0f   :  { %v851_v50 = vadd.f32 %v850_v49, %v849_v48 }
 0xd11   :  { %v852_v51 = vrot.slane %v851_v50, 2 }
 0xd13   :  { %v853_v52 = vadd.f32 %v852_v51, %v851_v50 }
 0xd15   :  { %v854_v53 = vrot.slane %v853_v52, 1 }
 0xd17   :  { %v855_v54 = vadd.f32 %v854_v53, %v853_v52 }
 0xd19   :  { %1012 = vpush %v855_v54 }
 0xd1a   :  { %1014 = vpush %v1059_v55 }
 0xd4a   :  { %s1013_s11 = spop %1012 }
 0xd4b   :  { %s1015_s12 = spop %1014 }
 0xd4c   :  { %s861_s4 = smul.f32 %s1015_s12, %s1013_s11 }
 0xd4e   :  { %863 = sst [smem:[#allocation7]] %s861_s4 }
 0xd4f   :  { %1113 = shalt.err (!%p1110_p4)
}
 0xd50   :  { %s1131_s16 = smov [#allocation7]  }
 0xd51   :  { %883 = dma.smem_to_hbm %s1131_s16, 16, %s1378_s6, [#allocation5]  }
 0xd52   :  { %1116 = dma.done.wait [#allocation4], 256  }
 0xd53   :  { %1117 = vsyncadd [#allocation4], 4294967040 }
 0xd54   :  { %1118 = dma.done.wait [#allocation5], 16  }
 0xd55   :  { %1119 = vsyncadd [#allocation5], 4294967280 }
 0xd56   :  { %890 = sfence }
 0xd57   :  { %891 = vsyncpa [#allocation3], 1 }
 0xd58   :  { %892 = vsyncpa [#allocation4], 1 }
 0xd59   :  { %893 = vsyncpa [#allocation5], 1 }

</bundles_post_ra>
